<compile_context>
chip_gen: v6e
topology: v6e:2x2x1
jax: 0.10.0
libtpu: 0.0.40
codegen_flags: <defaults>
</compile_context>

<pallas_src>
import math

import jax
import jax.numpy as jnp
from jax.experimental import pallas as pl
from jax.experimental.pallas import tpu as pltpu

TARGET_LENGTH = 6
LANE = 128
SUBLANE = 8


def _round_up(x, m):
    return ((x + m - 1) // m) * m


def encdec_kernel(x_ref, wenc_ref, benc_ref, wfold_ref, bfold_ref,
                  wdec_ref, bdec_ref, out_ref, acc_ref):
    k = pl.program_id(1)

    @pl.when(k == 0)
    def _init():
        acc_ref[...] = jnp.zeros_like(acc_ref)

    # Encoder partial matmul: bf16 MXU operands, f32 accumulation.
    acc_ref[...] += jnp.dot(x_ref[...], wenc_ref[...],
                            preferred_element_type=jnp.float32)

    @pl.when(k == pl.num_programs(1) - 1)
    def _finalize():
        dp = wdec_ref.shape[0]                     # padded decoder width (lane-aligned)

        # Encoder epilogue in f32 (VPU): bias + ReLU.
        emb = jnp.maximum(acc_ref[...] + benc_ref[...], 0.0)

        # Hoist loop-invariant decoder operands out of the unrolled loop.
        wdec = wdec_ref[...]                       # bf16
        bdec = bdec_ref[...]                       # f32

        # Step 0: affine layer folded into the first decoder step.
        out = jnp.tanh(
            jnp.dot(emb.astype(jnp.bfloat16), wfold_ref[...],
                    preferred_element_type=jnp.float32) + bfold_ref[...])
        out_ref[:, 0:dp] = out

        # Steps 1..5 (prev_state is None each step -> pure tanh(out @ W + b)).
        for t in range(1, TARGET_LENGTH):
            out = jnp.tanh(
                jnp.dot(out.astype(jnp.bfloat16), wdec,
                        preferred_element_type=jnp.float32) + bdec)
            out_ref[:, t * dp:(t + 1) * dp] = out  # lane-dense 128-wide store


def encoder_decoder_forward(x, params):
    B = x.shape[0]
    F = math.prod(x.shape[1:])
    E = params["w_enc"].shape[1]
    D = params["w_dec"].shape[1]

    # Lane-pad feature widths; sublane-pad / tile the batch.
    Ep = _round_up(E, LANE)
    Dp = _round_up(D, LANE)
    tb = min(LANE, _round_up(B, SUBLANE))          # rows per grid step
    Bp = _round_up(B, tb)
    tk = min(512, _round_up(F, LANE))              # K tile of the flattened features
    Fp = _round_up(F, tk)
    nb, nk = Bp // tb, Fp // tk

    def pad2(a, r, c, dtype):
        return (jnp.zeros((r, c), jnp.float32)
                .at[:a.shape[0], :a.shape[1]].set(a.astype(jnp.float32))
                .astype(dtype))

    x_flat = x.reshape(B, F)
    x_p = pad2(x_flat, Bp, Fp, jnp.bfloat16)

    # Fold the affine layer into the first decoder step (both linear, exact):
    #   tanh((emb @ Wa + ba) @ Wd + bd) = tanh(emb @ (Wa Wd) + (ba Wd + bd))
    w_fold = params["w_aff"] @ params["w_dec"]
    b_fold = params["b_aff"] @ params["w_dec"] + params["b_dec"]

    w_enc_p = pad2(params["w_enc"], Fp, Ep, jnp.bfloat16)
    b_enc_p = pad2(params["b_enc"], 1, Ep, jnp.float32)
    w_fold_p = pad2(w_fold, Ep, Dp, jnp.bfloat16)
    b_fold_p = pad2(b_fold, 1, Dp, jnp.float32)
    w_dec_p = pad2(params["w_dec"], Dp, Dp, jnp.bfloat16)
    b_dec_p = pad2(params["b_dec"], 1, Dp, jnp.float32)

    cost = pl.CostEstimate(
        flops=2 * B * F * E + 2 * TARGET_LENGTH * B * D * D,
        transcendentals=TARGET_LENGTH * B * D,
        bytes_accessed=(x_p.size * 2 + w_enc_p.size * 2 + w_fold_p.size * 2
                        + w_dec_p.size * 2 + (Ep + 2 * Dp) * 4
                        + Bp * TARGET_LENGTH * Dp * 4),
    )

    out_p = pl.pallas_call(
        encdec_kernel,
        out_shape=jax.ShapeDtypeStruct((Bp, TARGET_LENGTH * Dp), jnp.float32),
        grid_spec=pltpu.PrefetchScalarGridSpec(
            num_scalar_prefetch=0,
            grid=(nb, nk),
            in_specs=[
                pl.BlockSpec((tb, tk), lambda i, k: (i, k)),   # x tile
                pl.BlockSpec((tk, Ep), lambda i, k: (k, 0)),   # w_enc tile
                pl.BlockSpec((1, Ep), lambda i, k: (0, 0)),    # b_enc
                pl.BlockSpec((Ep, Dp), lambda i, k: (0, 0)),   # folded affine*dec W
                pl.BlockSpec((1, Dp), lambda i, k: (0, 0)),    # folded bias
                pl.BlockSpec((Dp, Dp), lambda i, k: (0, 0)),   # w_dec
                pl.BlockSpec((1, Dp), lambda i, k: (0, 0)),    # b_dec
            ],
            out_specs=pl.BlockSpec((tb, TARGET_LENGTH * Dp), lambda i, k: (i, 0)),
            scratch_shapes=[pltpu.VMEM((tb, Ep), jnp.float32)],
        ),
        compiler_params=pltpu.CompilerParams(
            dimension_semantics=("parallel", "arbitrary"),
            vmem_limit_bytes=32 * 1024 * 1024,
        ),
        cost_estimate=cost,
    )(x_p, w_enc_p, b_enc_p, w_fold_p, b_fold_p, w_dec_p, b_dec_p)

    return out_p.reshape(Bp, TARGET_LENGTH, Dp)[:B, :, :D]


def init_params(key, in_features, enc_out, dec_out):
    ks = jax.random.split(key, 6)
    scale = 0.05
    return {
        # weights stored as (in, out) so the kernel does x @ W directly
        # (equivalent to PyTorch's x @ W.T with W of shape (out, in))
        "w_enc": scale * jax.random.normal(ks[0], (in_features, enc_out), jnp.float32),
        "b_enc": scale * jax.random.normal(ks[1], (1, enc_out), jnp.float32),
        "w_aff": scale * jax.random.normal(ks[2], (enc_out, dec_out), jnp.float32),
        "b_aff": scale * jax.random.normal(ks[3], (1, dec_out), jnp.float32),
        "w_dec": scale * jax.random.normal(ks[4], (dec_out, dec_out), jnp.float32),
        "b_dec": scale * jax.random.normal(ks[5], (1, dec_out), jnp.float32),
    }


def reference_forward(x, params):
    # Pure-JAX f32 reference mirroring the PyTorch forward (unfolded affine).
    B = x.shape[0]
    x_flat = x.reshape(B, -1).astype(jnp.float32)
    emb = jnp.maximum(x_flat @ params["w_enc"] + params["b_enc"], 0.0)
    out = emb @ params["w_aff"] + params["b_aff"]
    outs = []
    for _ in range(TARGET_LENGTH):
        out = jnp.tanh(out @ params["w_dec"] + params["b_dec"])
        outs.append(out[:, None, :])
    return jnp.concatenate(outs, axis=1)


if __name__ == "__main__":
    B, C, H, W = 2, 4, 16, 16
    ENC_OUT, DEC_OUT = 32, 32

    key = jax.random.PRNGKey(0)
    kx, kp = jax.random.split(key)
    x = jax.random.normal(kx, (B, C, H, W), jnp.float32)
    params = init_params(kp, C * H * W, ENC_OUT, DEC_OUT)

    out = encoder_decoder_forward(x, params)
    out = jax.block_until_ready(out)

    ref = reference_forward(x, params)
    assert out.shape == (B, TARGET_LENGTH, DEC_OUT), out.shape
    # bf16 MXU operands + folded affine -> loosened tolerance vs. the f32 reference.
    assert jnp.allclose(out, ref, atol=2e-2, rtol=2e-2), "mismatch vs reference"

    print("KERNEL_OK")
</pallas_src>

<mosaic_0001>
module attributes {stable_mosaic.version = 11 : i64} {
  func.func @encdec_kernel(%arg0: i32, %arg1: i32, %arg2: memref<8x512xbf16, #tpu.memory_space<vmem>>, %arg3: memref<512x128xbf16, #tpu.memory_space<vmem>>, %arg4: memref<1x128xf32, #tpu.memory_space<vmem>>, %arg5: memref<128x128xbf16, #tpu.memory_space<vmem>>, %arg6: memref<1x128xf32, #tpu.memory_space<vmem>>, %arg7: memref<128x128xbf16, #tpu.memory_space<vmem>>, %arg8: memref<1x128xf32, #tpu.memory_space<vmem>>, %arg9: memref<8x768xf32, #tpu.memory_space<vmem>>, %arg10: memref<8x128xf32, #tpu.memory_space<vmem>>) attributes {dimension_semantics = [#tpu.dimension_semantics<parallel>, #tpu.dimension_semantics<arbitrary>], iteration_bounds = array<i64: 1, 2>, scalar_prefetch = 0 : i64, scratch_operands = 1 : i64, tpu.core_type = #tpu.core_type<tc>, window_params = [{transform_indices = @transform_0, window_bounds = array<i64: 8, 512>}, {transform_indices = @transform_1, window_bounds = array<i64: 512, 128>}, {pipeline_mode = #tpu.pipeline_mode<synchronous>, transform_indices = @transform_2, window_bounds = array<i64: 1, 128>}, {pipeline_mode = #tpu.pipeline_mode<synchronous>, transform_indices = @transform_3, window_bounds = array<i64: 128, 128>}, {pipeline_mode = #tpu.pipeline_mode<synchronous>, transform_indices = @transform_4, window_bounds = array<i64: 1, 128>}, {pipeline_mode = #tpu.pipeline_mode<synchronous>, transform_indices = @transform_5, window_bounds = array<i64: 128, 128>}, {pipeline_mode = #tpu.pipeline_mode<synchronous>, transform_indices = @transform_6, window_bounds = array<i64: 1, 128>}, {transform_indices = @transform_7, window_bounds = array<i64: 8, 768>}]} {
    %c0_i32 = arith.constant 0 : i32
    %0 = arith.cmpi eq, %arg1, %c0_i32 : i32
    %1 = arith.extui %0 : i1 to i32
    %c0_i32_0 = arith.constant 0 : i32
    %2 = arith.cmpi ne, %1, %c0_i32_0 : i32
    scf.if %2 {
      %cst_9 = arith.constant 0.000000e+00 : f32
      %12 = vector.broadcast %cst_9 : f32 to vector<8x128xf32>
      %c0_10 = arith.constant 0 : index
      %c0_11 = arith.constant 0 : index
      %13 = vector.load %arg10[%c0_10, %c0_11] : memref<8x128xf32, #tpu.memory_space<vmem>>, vector<8x128xf32>
      tpu.vector_store %arg10[%c0_10, %c0_11], %12 {strides = array<i32>} : memref<8x128xf32, #tpu.memory_space<vmem>>, vector<8x128xf32>,
    } else {
    }
    %c0 = arith.constant 0 : index
    %c0_1 = arith.constant 0 : index
    %3 = vector.load %arg10[%c0, %c0_1] : memref<8x128xf32, #tpu.memory_space<vmem>>, vector<8x128xf32>
    %c0_2 = arith.constant 0 : index
    %c0_3 = arith.constant 0 : index
    %4 = vector.load %arg2[%c0_2, %c0_3] : memref<8x512xbf16, #tpu.memory_space<vmem>>, vector<8x512xbf16>
    %c0_4 = arith.constant 0 : index
    %c0_5 = arith.constant 0 : index
    %5 = vector.load %arg3[%c0_4, %c0_5] : memref<512x128xbf16, #tpu.memory_space<vmem>>, vector<512x128xbf16>
    %cst = arith.constant dense<0.000000e+00> : vector<8x128xf32>
    %6 = tpu.matmul %4, %5, %cst {dimension_numbers = #tpu.dot_dimension_numbers<[1], [0], [0], [1], [0, 0, 1, 1], [], []>} : vector<8x512xbf16>, vector<512x128xbf16>, vector<8x128xf32> -> vector<8x128xf32>
    %7 = arith.addf %3, %6 : vector<8x128xf32>
    %c0_6 = arith.constant 0 : index
    %c0_7 = arith.constant 0 : index
    %8 = vector.load %arg10[%c0_6, %c0_7] : memref<8x128xf32, #tpu.memory_space<vmem>>, vector<8x128xf32>
    tpu.vector_store %arg10[%c0_6, %c0_7], %7 {strides = array<i32>} : memref<8x128xf32, #tpu.memory_space<vmem>>, vector<8x128xf32>,
    %c1_i32 = arith.constant 1 : i32
    %9 = arith.cmpi eq, %arg1, %c1_i32 : i32
    %10 = arith.extui %9 : i1 to i32
    %c0_i32_8 = arith.constant 0 : i32
    %11 = arith.cmpi ne, %10, %c0_i32_8 : i32
    scf.if %11 {
      %c0_9 = arith.constant 0 : index
      %c0_10 = arith.constant 0 : index
      %12 = vector.load %arg10[%c0_9, %c0_10] : memref<8x128xf32, #tpu.memory_space<vmem>>, vector<8x128xf32>
      %c0_11 = arith.constant 0 : index
      %c0_12 = arith.constant 0 : index
      %13 = vector.load %arg4[%c0_11, %c0_12] : memref<1x128xf32, #tpu.memory_space<vmem>>, vector<1x128xf32>
      %14 = vector.broadcast %13 : vector<1x128xf32> to vector<8x128xf32>
      %15 = arith.addf %12, %14 : vector<8x128xf32>
      %cst_13 = arith.constant 0.000000e+00 : f32
      %16 = vector.broadcast %cst_13 : f32 to vector<8x128xf32>
      %17 = arith.maximumf %15, %16 : vector<8x128xf32>
      %c0_14 = arith.constant 0 : index
      %c0_15 = arith.constant 0 : index
      %18 = vector.load %arg7[%c0_14, %c0_15] : memref<128x128xbf16, #tpu.memory_space<vmem>>, vector<128x128xbf16>
      %c0_16 = arith.constant 0 : index
      %c0_17 = arith.constant 0 : index
      %19 = vector.load %arg8[%c0_16, %c0_17] : memref<1x128xf32, #tpu.memory_space<vmem>>, vector<1x128xf32>
      %20 = arith.truncf %17 : vector<8x128xf32> to vector<8x128xbf16>
      %c0_18 = arith.constant 0 : index
      %c0_19 = arith.constant 0 : index
      %21 = vector.load %arg5[%c0_18, %c0_19] : memref<128x128xbf16, #tpu.memory_space<vmem>>, vector<128x128xbf16>
      %cst_20 = arith.constant dense<0.000000e+00> : vector<8x128xf32>
      %22 = tpu.matmul %20, %21, %cst_20 {dimension_numbers = #tpu.dot_dimension_numbers<[1], [0], [0], [1], [0, 0, 1, 1], [], []>} : vector<8x128xbf16>, vector<128x128xbf16>, vector<8x128xf32> -> vector<8x128xf32>
      %c0_21 = arith.constant 0 : index
      %c0_22 = arith.constant 0 : index
      %23 = vector.load %arg6[%c0_21, %c0_22] : memref<1x128xf32, #tpu.memory_space<vmem>>, vector<1x128xf32>
      %24 = vector.broadcast %23 : vector<1x128xf32> to vector<8x128xf32>
      %25 = arith.addf %22, %24 : vector<8x128xf32>
      %26 = math.tanh %25 : vector<8x128xf32>
      %c0_23 = arith.constant 0 : index
      %c0_24 = arith.constant 0 : index
      %27 = vector.load %arg9[%c0_23, %c0_24] : memref<8x768xf32, #tpu.memory_space<vmem>>, vector<8x128xf32>
      tpu.vector_store %arg9[%c0_23, %c0_24], %26 {strides = array<i32>} : memref<8x768xf32, #tpu.memory_space<vmem>>, vector<8x128xf32>,
      %28 = arith.truncf %26 : vector<8x128xf32> to vector<8x128xbf16>
      %cst_25 = arith.constant dense<0.000000e+00> : vector<8x128xf32>
      %29 = tpu.matmul %28, %18, %cst_25 {dimension_numbers = #tpu.dot_dimension_numbers<[1], [0], [0], [1], [0, 0, 1, 1], [], []>} : vector<8x128xbf16>, vector<128x128xbf16>, vector<8x128xf32> -> vector<8x128xf32>
      %30 = vector.broadcast %19 : vector<1x128xf32> to vector<8x128xf32>
      %31 = arith.addf %29, %30 : vector<8x128xf32>
      %32 = math.tanh %31 : vector<8x128xf32>
      %c0_26 = arith.constant 0 : index
      %c128 = arith.constant 128 : index
      %33 = vector.load %arg9[%c0_26, %c128] : memref<8x768xf32, #tpu.memory_space<vmem>>, vector<8x128xf32>
      tpu.vector_store %arg9[%c0_26, %c128], %32 {strides = array<i32>} : memref<8x768xf32, #tpu.memory_space<vmem>>, vector<8x128xf32>,
      %34 = arith.truncf %32 : vector<8x128xf32> to vector<8x128xbf16>
      %cst_27 = arith.constant dense<0.000000e+00> : vector<8x128xf32>
      %35 = tpu.matmul %34, %18, %cst_27 {dimension_numbers = #tpu.dot_dimension_numbers<[1], [0], [0], [1], [0, 0, 1, 1], [], []>} : vector<8x128xbf16>, vector<128x128xbf16>, vector<8x128xf32> -> vector<8x128xf32>
      %36 = vector.broadcast %19 : vector<1x128xf32> to vector<8x128xf32>
      %37 = arith.addf %35, %36 : vector<8x128xf32>
      %38 = math.tanh %37 : vector<8x128xf32>
      %c0_28 = arith.constant 0 : index
      %c256 = arith.constant 256 : index
      %39 = vector.load %arg9[%c0_28, %c256] : memref<8x768xf32, #tpu.memory_space<vmem>>, vector<8x128xf32>
      tpu.vector_store %arg9[%c0_28, %c256], %38 {strides = array<i32>} : memref<8x768xf32, #tpu.memory_space<vmem>>, vector<8x128xf32>,
      %40 = arith.truncf %38 : vector<8x128xf32> to vector<8x128xbf16>
      %cst_29 = arith.constant dense<0.000000e+00> : vector<8x128xf32>
      %41 = tpu.matmul %40, %18, %cst_29 {dimension_numbers = #tpu.dot_dimension_numbers<[1], [0], [0], [1], [0, 0, 1, 1], [], []>} : vector<8x128xbf16>, vector<128x128xbf16>, vector<8x128xf32> -> vector<8x128xf32>
      %42 = vector.broadcast %19 : vector<1x128xf32> to vector<8x128xf32>
      %43 = arith.addf %41, %42 : vector<8x128xf32>
      %44 = math.tanh %43 : vector<8x128xf32>
      %c0_30 = arith.constant 0 : index
      %c384 = arith.constant 384 : index
      %45 = vector.load %arg9[%c0_30, %c384] : memref<8x768xf32, #tpu.memory_space<vmem>>, vector<8x128xf32>
      tpu.vector_store %arg9[%c0_30, %c384], %44 {strides = array<i32>} : memref<8x768xf32, #tpu.memory_space<vmem>>, vector<8x128xf32>,
      %46 = arith.truncf %44 : vector<8x128xf32> to vector<8x128xbf16>
      %cst_31 = arith.constant dense<0.000000e+00> : vector<8x128xf32>
      %47 = tpu.matmul %46, %18, %cst_31 {dimension_numbers = #tpu.dot_dimension_numbers<[1], [0], [0], [1], [0, 0, 1, 1], [], []>} : vector<8x128xbf16>, vector<128x128xbf16>, vector<8x128xf32> -> vector<8x128xf32>
      %48 = vector.broadcast %19 : vector<1x128xf32> to vector<8x128xf32>
      %49 = arith.addf %47, %48 : vector<8x128xf32>
      %50 = math.tanh %49 : vector<8x128xf32>
      %c0_32 = arith.constant 0 : index
      %c512 = arith.constant 512 : index
      %51 = vector.load %arg9[%c0_32, %c512] : memref<8x768xf32, #tpu.memory_space<vmem>>, vector<8x128xf32>
      tpu.vector_store %arg9[%c0_32, %c512], %50 {strides = array<i32>} : memref<8x768xf32, #tpu.memory_space<vmem>>, vector<8x128xf32>,
      %52 = arith.truncf %50 : vector<8x128xf32> to vector<8x128xbf16>
      %cst_33 = arith.constant dense<0.000000e+00> : vector<8x128xf32>
      %53 = tpu.matmul %52, %18, %cst_33 {dimension_numbers = #tpu.dot_dimension_numbers<[1], [0], [0], [1], [0, 0, 1, 1], [], []>} : vector<8x128xbf16>, vector<128x128xbf16>, vector<8x128xf32> -> vector<8x128xf32>
      %54 = vector.broadcast %19 : vector<1x128xf32> to vector<8x128xf32>
      %55 = arith.addf %53, %54 : vector<8x128xf32>
      %56 = math.tanh %55 : vector<8x128xf32>
      %c0_34 = arith.constant 0 : index
      %c640 = arith.constant 640 : index
      %57 = vector.load %arg9[%c0_34, %c640] : memref<8x768xf32, #tpu.memory_space<vmem>>, vector<8x128xf32>
      tpu.vector_store %arg9[%c0_34, %c640], %56 {strides = array<i32>} : memref<8x768xf32, #tpu.memory_space<vmem>>, vector<8x128xf32>,
    } else {
    }
    return
  }
  func.func @transform_0(%arg0: i32, %arg1: i32) -> (i32, i32) {
    %c0_i32 = arith.constant 0 : i32
    return %arg0, %arg1 : i32, i32
  }
  func.func @transform_1(%arg0: i32, %arg1: i32) -> (i32, i32) {
    %c0_i32 = arith.constant 0 : i32
    %c0_i32_0 = arith.constant 0 : i32
    return %arg1, %c0_i32 : i32, i32
  }
  func.func @transform_2(%arg0: i32, %arg1: i32) -> (i32, i32) {
    %c0_i32 = arith.constant 0 : i32
    %c0_i32_0 = arith.constant 0 : i32
    %c0_i32_1 = arith.constant 0 : i32
    return %c0_i32, %c0_i32_0 : i32, i32
  }
  func.func @transform_3(%arg0: i32, %arg1: i32) -> (i32, i32) {
    %c0_i32 = arith.constant 0 : i32
    %c0_i32_0 = arith.constant 0 : i32
    %c0_i32_1 = arith.constant 0 : i32
    return %c0_i32, %c0_i32_0 : i32, i32
  }
  func.func @transform_4(%arg0: i32, %arg1: i32) -> (i32, i32) {
    %c0_i32 = arith.constant 0 : i32
    %c0_i32_0 = arith.constant 0 : i32
    %c0_i32_1 = arith.constant 0 : i32
    return %c0_i32, %c0_i32_0 : i32, i32
  }
  func.func @transform_5(%arg0: i32, %arg1: i32) -> (i32, i32) {
    %c0_i32 = arith.constant 0 : i32
    %c0_i32_0 = arith.constant 0 : i32
    %c0_i32_1 = arith.constant 0 : i32
    return %c0_i32, %c0_i32_0 : i32, i32
  }
  func.func @transform_6(%arg0: i32, %arg1: i32) -> (i32, i32) {
    %c0_i32 = arith.constant 0 : i32
    %c0_i32_0 = arith.constant 0 : i32
    %c0_i32_1 = arith.constant 0 : i32
    return %c0_i32, %c0_i32_0 : i32, i32
  }
  func.func @transform_7(%arg0: i32, %arg1: i32) -> (i32, i32) {
    %c0_i32 = arith.constant 0 : i32
    %c0_i32_0 = arith.constant 0 : i32
    return %arg0, %c0_i32 : i32, i32
  }
}

</mosaic_0001>

<bundles_post_ra>
// kernel: tpu_custom_call.1
= control target key start
LH: loop header
LB: loop body
LE: loop exit
PB: predicated region body
PF: predicated region fallthrough
CT: control target
= control target key end

     0   :  { %s2318_s0 = inlined_call_operand.hbm [shape: bf16[8,1024], index: 0, kind: input, shape index: {}]   ;;  %s2319_s1 = inlined_call_operand.hbm [shape: bf16[1024,128], index: 1, kind: input, shape index: {}]   ;;  %s2320_s2 = inlined_call_operand.vmem [shape: f32[1,128], index: 2, kind: input, shape index: {}]   ;;  %s2321_s3 = inlined_call_operand.hbm [shape: bf16[128,128], index: 3, kind: input, shape index: {}]   ;;  %s2322_s4 = inlined_call_operand.vmem [shape: f32[1,128], index: 4, kind: input, shape index: {}]   ;;  %s2323_s5 = inlined_call_operand.hbm [shape: bf16[128,128], index: 5, kind: input, shape index: {}]   ;;  %s2324_s6 = inlined_call_operand.vmem [shape: f32[1,128], index: 6, kind: input, shape index: {}]   ;;  %s2325_s7 = inlined_call_operand.hbm [shape: f32[8,768], index: 7, kind: output, shape index: {}]  }
   0x1   :  { %2329 = sst [smem:[#allocation18_spill]] %s2318_s0 }
   0x2   :  { %2330 = sst [smem:[#allocation19_spill]] %s2321_s3 }
   0x3   :  { %2331 = sst [smem:[#allocation20_spill]] %s2323_s5 }
   0x4   :  { %12 = vsyncpa [#allocation4], 0 }
   0x5   :  { %14 = vsyncpa [#allocation4 + $0x1], 0 }
   0x6   :  { %15 = vsyncpa [#allocation7], 0 }
   0x7   :  { %17 = vsyncpa [#allocation7 + $0x1], 0 }
   0x8   :  { %18 = vsyncpa [#allocation10], 0 }
   0x9   :  { %19 = vsyncpa [#allocation5], 0  ;;  %s1970_s24 = smov 0   ;;  %s1972_s25 = smov 0  }
   0xa   :  { %s1974_s26 = smov 0   ;;  %s1976_s27 = smov 0  }
   0xb   :  { %s1978_s28 = smov 0   ;;  %s1980_s29 = smov 0  }
   0xc LB: > { %s1999_s30 = sadd.s32 4294967295, %s1918_s29   ;;  %p59_p0 = scmp.ne.s32.totalorder %s1902_s25, %s1898_s24  ;;  %s1918_s29 = sphi %s1980_s29, %s25_s29   ;;  %s1914_s28 = sphi %s1978_s28, %s2347_s28   ;;  %s1910_s27 = sphi %s1976_s27, %s2346_s27   ;;  %s1906_s26 = sphi %s1974_s26, %s2345_s26   ;;  %s1902_s25 = sphi %s1972_s25, %s2344_s25   ;;  %s1898_s24 = sphi %s1970_s24, %s2343_s24  }
   0xd   : > { %p60_p1 = scmp.eq.s32.totalorder %s1999_s30, 0  ;;  %p1267_p2 = scmp.ge.s32.totalorder %s1918_s29, 1 }
   0xe   : > { %p227_p3 = scmp.lt.s32.totalorder %s1918_s29, 3  ;;  %s1920_s10 = smov [#allocation8]  }
   0xf   : > { %p2007_p4 = por %p60_p1, %p59_p0  ;;  %s242_s11 = sshll.u32 %s1920_s10, 4  ;;  %s243_s11 = int_to_ptr.vmem [resolvable:$true] %s242_s11 }
  0x10   : > { %p2011_p5 = pnand %p1267_p2, %p227_p3  ;;  %s1921_s13 = smov [#allocation9]  }
  0x11   : > { %s258_s14 = sshll.u32 %s1921_s13, 4  ;;  %s1731_s15 = scalar_lea.vmem %s243_s11, 1024  ;;  %s259_s14 = int_to_ptr.vmem [resolvable:$true] %s258_s14 }
  0x12   : > { %p1579_p6 = pneg %p2011_p5  ;;  %p1732_p9 = scmp.ne.s32.totalorder %s243_s11, %s1731_s15 }
  0x13   : > { %p1739_p12 = scmp.lt.s32.totalorder %s243_s11, %s243_s11  ;;  %p1740_p13 = scmp.lt.s32.totalorder %s1731_s15, %s1731_s15 }
  0x14   : > { %p2019_p7 = pnand %p1579_p6, %p60_p1 }
  0x15   : > { %p1741_p0 = por %p1740_p13, %p1739_p12 }
  0x16   : > { %p1722_p8 = pneg %p2019_p7 }
  0x18   : > { %p1734_p10 = pnand %p1732_p9, %p1722_p8 }
  0x1a   : > { %p1735_p11 = pneg %p1734_p10 }
  0x1c   : > { %p1742_p2 = pnand %p1741_p0, %p1735_p11 }
  0x1e   : > { %1745 = shalt.err (!%p1742_p2)
}
  0x1f   : > { %s2326_s16 = smov 64   ;;  %s2327_s17 = smov 4  }
  0x20   : > { %s2335_s3 = sld [smem:[#allocation19_spill]]  ;;  %s1757_s20 = scalar_lea.vmem %s259_s14, 1024 }
  0x21   : > { %p1758_p3 = scmp.ne.s32.totalorder %s259_s14, %s1757_s20  ;;  %p1765_p10 = scmp.lt.s32.totalorder %s259_s14, %s259_s14 }
  0x22   : > { %p1766_p11 = scmp.lt.s32.totalorder %s1757_s20, %s1757_s20 }
  0x23   : > { %p1760_p6 = pnand %p1758_p3, %p1722_p8 }
  0x24   : > { %p1767_p12 = por %p1766_p11, %p1765_p10 }
  0x25   : > { %p1761_p9 = pneg %p1760_p6 }
  0x26   : > { %1582 = dma.hbm_to_vmem [thread:$0]  (!%p2019_p7), %s2335_s3, 1024, %s243_s11, [#allocation7], %s2326_s16, %s2326_s16, %s2327_s17  }
  0x27   : > { %p1768_p13 = pnand %p1767_p12, %p1761_p9 }
  0x29   : > { %1771 = shalt.err (!%p1768_p13)
}
  0x2a   : > { %s2336_s5 = sld [smem:[#allocation20_spill]]  ;;  %s34_s23 = sadd.s32 1, %s1914_s28 }
  0x2b   : > { %s46_s24 = sadd.s32 1, %s1906_s26  ;;  %p35_p8 = scmp.ge.s32.totalorder %s34_s23, 2 }
  0x2c   : > { %p53_p0 = scmp.ne.s32.totalorder %s1906_s26, %s1902_s25  ;;  %p54_p2 = scmp.eq.s32.totalorder %s1918_s29, 0 }
  0x2d   : > { %p1595_p3 = scmp.lt.s32.totalorder %s1918_s29, 2  ;;  %s2349_s23 = smov (%p35_p8, %s34_s23), 0 }
  0x2e   : > { %2337 = sst [smem:[#allocation17_spill]] %s2349_s23  ;;  %p55_p6 = por %p54_p2, %p53_p0 }
  0x2f   : > { %s2056_s10 = sand.u32 1, %s1906_s26   ;;  %s42_s11 = ssub.s32 %s1914_s28, %s2349_s23 }
  0x30   : > { %1585 = dma.hbm_to_vmem [thread:$0]  (!%p2019_p7), %s2336_s5, 1024, %s259_s14, [#allocation10], %s2326_s16, %s2326_s16, %s2327_s17  }
  0x31   : > { %p44_p9 = scmp.eq.s32.totalorder %s42_s11, 0  ;;  %s1271_s12 = sshll.u32 %s2056_s10, 4 }
  0x32   : > { %s1343_s13 = sshll.u32 %s1914_s28, 8  ;;  %s2338_s0 = sld [smem:[#allocation18_spill]] }
  0x33   : > { %s2063_s14 = scalar_select %p44_p9, %s1906_s26, %s46_s24  }
  0x34   : > { %s279_s20 = scalar_lea.vmem [#allocation3], %s1271_s12  ;;  %p2070_p7 = pnand %p1595_p3, %p55_p6 }
  0x35   : > { %s289_s21 = sshll.u32 %s279_s20, 4  ;;  %s1274_s16 = sshll.u32 %s2056_s10, 8  ;;  %s290_s21 = int_to_ptr.vmem [resolvable:$true] %s289_s21 }
  0x36   : > { %s1344_s11 = sshll.u32 %s1914_s28, 12  ;;  %s276_s17 = scalar_lea.sflag [#allocation4], %s2056_s10 }
  0x37   : > { %p1774_p10 = pneg %p2070_p7  ;;  %s1785_s24 = scalar_lea.vmem %s290_s21, 256 }
  0x38   : > { %s287_s19 = scalar_lea.hbm %s2338_s0, %s1343_s13  ;;  %p1786_p11 = scmp.ne.s32.totalorder %s290_s21, %s1785_s24 }
  0x39   : > { %s1924_s12 = smov [#allocation3]  }
  0x3a   : > { %p1788_p12 = pnand %p1786_p11, %p1774_p10  ;;  %s1790_s13 = sshll.u32 %s1924_s12, 4  ;;  %s1791_s13 = int_to_ptr.vmem [resolvable:$false] %s1790_s13 }
  0x3b   : > { %s1792_s15 = scalar_lea.vmem %s1791_s13, 512  ;;  %p1793_p8 = scmp.lt.s32.totalorder %s290_s21, %s1791_s13 }
  0x3c   : > { %p1789_p13 = pneg %p1788_p12  ;;  %p1794_p0 = scmp.lt.s32.totalorder %s1792_s15, %s1785_s24 }
  0x3e   : > { %p1795_p2 = por %p1794_p0, %p1793_p8 }
  0x40   : > { %p1796_p3 = pnand %p1795_p2, %p1789_p13 }
  0x42   : > { %1799 = shalt.err (!%p1796_p3)
}
  0x43   : > { %1589 = dma.hbm_to_vmem [thread:$0]  (!%p2070_p7), %s287_s19, 256, %s290_s21, %s276_s17  }
  0x44   : > { %s300_s10 = scalar_lea.vmem [#allocation6], %s1274_s16  ;;  %s296_s20 = sand.u32 1, %s1918_s29  }
  0x45   : > { %s307_s18 = sshll.u32 %s300_s10, 4  ;;  %s306_s12 = scalar_lea.hbm %s2319_s1, %s1344_s11  ;;  %s308_s18 = int_to_ptr.vmem [resolvable:$true] %s307_s18 }
  0x46   : > { %s297_s5 = scalar_lea.sflag [#allocation7], %s296_s20  ;;  %s1813_s23 = scalar_lea.vmem %s308_s18, 4096 }
  0x47   : > { %p1814_p6 = scmp.ne.s32.totalorder %s308_s18, %s1813_s23  ;;  %s1925_s24 = smov [#allocation6]  }
  0x48   : > { %s1818_s13 = sshll.u32 %s1925_s24, 4  ;;  %s1819_s13 = int_to_ptr.vmem [resolvable:$false] %s1818_s13 }
  0x49   : > { %p1816_p9 = pnand %p1814_p6, %p1774_p10  ;;  %s1820_s15 = scalar_lea.vmem %s1819_s13, 8192 }
  0x4a   : > { %p1821_p12 = scmp.lt.s32.totalorder %s308_s18, %s1819_s13  ;;  %p1822_p13 = scmp.lt.s32.totalorder %s1820_s15, %s1813_s23 }
  0x4b   : > { %p1817_p11 = pneg %p1816_p9 }
  0x4c   : > { %p1823_p8 = por %p1822_p13, %p1821_p12 }
  0x4e   : > { %p1824_p0 = pnand %p1823_p8, %p1817_p11 }
  0x50   : > { %1827 = shalt.err (!%p1824_p0)
}
  0x51   : > { %s2340_s0 = smov 4   ;;  %s2341_s3 = smov 64  }
  0x52   : > { %1592 = dma.hbm_to_vmem [thread:$0]  (!%p2070_p7), %s306_s12, 4096, %s308_s18, %s297_s5, %s2341_s3, %s2341_s3, %s2340_s0  }
  0x53   : > { %319 = sbr.rel (%p2011_p5) target bundleno = 1655 (0x677), region = 48  ;;  %s321_s16 = sand.u32 (!%p2011_p5), 1, %s1902_s25  }
  0x54   : > { %s1278_s17 = sshll.u32 (!%p2011_p5), %s321_s16, 4  ;;  %s322_s19 = scalar_lea.sflag (!%p2011_p5), [#allocation4], %s321_s16 }
  0x55   : > { %s2099_s21 = scalar_lea.vmem (!%p2011_p5), [#allocation3], %s1278_s17 }
  0x58   : > { %1877 = dma.done.wait (%p2007_p4), %s322_s19, 256  }
  0x59   : > { %1879 = vsyncadd (%p2007_p4), %s322_s19, 4294967040  ;;  %s330_s23 = sand.u32 1, %s1999_s30   ;;  %s1279_s22 = sshll.u32 %s321_s16, 8 }
  0x5a   : > { %s331_s5 = scalar_lea.sflag [#allocation7], %s330_s23  ;;  %s2106_s11 = scalar_lea.vmem [#allocation6], %s1279_s22 }
  0x5b   : > { %1881 = dma.done.wait (%p2007_p4), %s331_s5, 4096  }
  0x5c   : > { %1883 = vsyncadd (%p2007_p4), %s331_s5, 4294963200 }
  0x5d   : > { %1885 = dma.done.wait (%p60_p1), [#allocation7], 1024  }
  0x5e   : > { %1887 = vsyncadd (%p60_p1), [#allocation7], 4294966272 }
  0x5f   : > { %1889 = dma.done.wait (%p60_p1), [#allocation10], 1024  }
  0x60   : > { %1891 = vsyncadd (%p60_p1), [#allocation10], 4294966272  ;;  %p1282_p5 = scmp.ne.s32.totalorder %s1910_s27, 0 }
  0x62   : > { %379 = sbr.rel (%p1282_p5) target bundleno = 105 (0x69), region = 68 }
  0x67   : > { %v1926_v0 = vmov 0.0  }
  0x68   : > { %380 = vst [vmem:[#allocation2] sm:$0xff] %v1926_v0 }
  0x69 PF: > { %v1656_v1 = vld [vmem:[%s2106_s11 + $0x78] sm:$0xff]   ;;  %v1660_v5 = vld [vmem:[%s2106_s11 + $0x70] sm:$0xff]   ;;  %v1664_v9 = vld [vmem:[%s2106_s11 + $0x68] sm:$0xff]   ;;  %p1319_p1 = scmp.ne.s32.totalorder %s1910_s27, 1 }
  0x6a   : > { %v1657_v2 = vld [vmem:[%s2106_s11 + $0xf8] sm:$0xff]   ;;  %1345 = vmatprep.subr.bf16.mxu0 %v1656_v1  ;;  %v1661_v6 = vld [vmem:[%s2106_s11 + $0xf0] sm:$0xff]   ;;  %v1665_v10 = vld [vmem:[%s2106_s11 + $0xe8] sm:$0xff]  }
  0x6b   : > { %v1658_v3 = vld [vmem:[%s2106_s11 + $0x38] sm:$0xff]   ;;  %1367 = vmatprep.subr.bf16.mxu1 %v1657_v2  ;;  %v1662_v7 = vld [vmem:[%s2106_s11 + $0x30] sm:$0xff]   ;;  %v1666_v11 = vld [vmem:[%s2106_s11 + $0x28] sm:$0xff]  }
  0x6c   : > { %v1659_v4 = vld [vmem:[%s2106_s11 + $0xb8] sm:$0xff]   ;;  %1346 = vmatpush3.bf16.msra.mxu0 %v1658_v3  ;;  %v1663_v8 = vld [vmem:[%s2106_s11 + $0xb0] sm:$0xff]   ;;  %v1667_v12 = vld [vmem:[%s2106_s11 + $0xa8] sm:$0xff]  }
  0x6d   : > { %1368 = vmatpush3.bf16.msra.mxu1 %v1659_v4  ;;  %1347 = vmatprep.subr.bf16.mxu0 %v1660_v5  ;;  %v1668_v13 = vld [vmem:[%s2106_s11 + $0x60] sm:$0xff]   ;;  %v1672_v17 = vld [vmem:[%s2106_s11 + $0x58] sm:$0xff]   ;;  %v1676_v21 = vld [vmem:[%s2106_s11 + $0x50] sm:$0xff]  }
  0x6e   : > { %1369 = vmatprep.subr.bf16.mxu1 %v1661_v6  ;;  %v1669_v14 = vld [vmem:[%s2106_s11 + $0xe0] sm:$0xff]   ;;  %v1673_v18 = vld [vmem:[%s2106_s11 + $0xd8] sm:$0xff]   ;;  %v1677_v22 = vld [vmem:[%s2106_s11 + $0xd0] sm:$0xff]  }
  0x6f   : > { %v1670_v15 = vld [vmem:[%s2106_s11 + $0x20] sm:$0xff]   ;;  %v1674_v19 = vld [vmem:[%s2106_s11 + $0x18] sm:$0xff]   ;;  %v1678_v23 = vld [vmem:[%s2106_s11 + $0x10] sm:$0xff]  }
  0x70   : > { %1348 = vmatpush3.bf16.msra.mxu0 %v1662_v7  ;;  %v1671_v16 = vld [vmem:[%s2106_s11 + $0xa0] sm:$0xff]   ;;  %v1675_v20 = vld [vmem:[%s2106_s11 + $0x98] sm:$0xff]   ;;  %v1679_v24 = vld [vmem:[%s2106_s11 + $0x90] sm:$0xff]  }
  0x71   : > { %1370 = vmatpush3.bf16.msra.mxu1 %v1663_v8  ;;  %1349 = vmatprep.subr.bf16.mxu0 %v1664_v9  ;;  %v1680_v25 = vld [vmem:[%s2106_s11 + $0x48] sm:$0xff]   ;;  %v1684_v29 = vld [vmem:[%s2106_s11 + $0x40] sm:$0xff]   ;;  %v381_v45 = vld [vmem:[#allocation2] sm:$0xff] }
  0x72   : > { %1371 = vmatprep.subr.bf16.mxu1 %v1665_v10  ;;  %v1681_v26 = vld [vmem:[%s2106_s11 + $0xc8] sm:$0xff]   ;;  %v1685_v30 = vld [vmem:[%s2106_s11 + $0xc0] sm:$0xff]  }
  0x73   : > { %v1682_v27 = vld [vmem:[%s2106_s11 + $0x8] sm:$0xff]   ;;  %v1686_v31 = vld [vmem:[%s2106_s11] sm:$0xff]  }
  0x74   : > { %1350 = vmatpush3.bf16.msra.mxu0 %v1666_v11  ;;  %v1683_v28 = vld [vmem:[%s2106_s11 + $0x88] sm:$0xff]   ;;  %v1687_v32 = vld [vmem:[%s2106_s11 + $0x80] sm:$0xff]  }
  0x75   : > { %1372 = vmatpush3.bf16.msra.mxu1 %v1667_v12  ;;  %1351 = vmatprep.subr.bf16.mxu0 %v1668_v13  ;;  %v382_v33 = vld [vmem:[%s2099_s21] sm:$0xff]  ;;  %v383_v34 = vld [vmem:[%s2099_s21 + $0x8] sm:$0xff] }
  0x76   : > { %1373 = vmatprep.subr.bf16.mxu1 %v1669_v14  ;;  %v1283_v35 = vcombine.low %v382_v33, %v382_v33  ;;  %v1284_v36 = vcombine.high %v382_v33, %v382_v33  ;;  %v1285_v37 = vcombine.low %v383_v34, %v383_v34  ;;  %v1286_v38 = vcombine.high %v383_v34, %v383_v34 }
  0x78   : > { %1352 = vmatpush3.bf16.msra.mxu0 %v1670_v15  ;;  %686 = vmatprep.mubr.bf16.mxu0 %v1284_v36 }
  0x79   : > { %1374 = vmatpush3.bf16.msra.mxu1 %v1671_v16  ;;  %1353 = vmatprep.subr.bf16.mxu0 %v1672_v17 }
  0x7a   : > { %1375 = vmatprep.subr.bf16.mxu1 %v1673_v18  ;;  %726 = vmatprep.mubr.bf16.mxu1 %v1286_v38 }
  0x7c   : > { %1354 = vmatpush3.bf16.msra.mxu0 %v1674_v19 }
  0x7d   : > { %1376 = vmatpush3.bf16.msra.mxu1 %v1675_v20  ;;  %1355 = vmatprep.subr.bf16.mxu0 %v1676_v21 }
  0x7e   : > { %1377 = vmatprep.subr.bf16.mxu1 %v1677_v22 }
  0x80   : > { %1356 = vmatpush3.bf16.msra.mxu0 %v1678_v23 }
  0x81   : > { %1378 = vmatpush3.bf16.msra.mxu1 %v1679_v24  ;;  %1357 = vmatprep.subr.bf16.mxu0 %v1680_v25 }
  0x82   : > { %1379 = vmatprep.subr.bf16.mxu1 %v1681_v26 }
  0x84   : > { %1358 = vmatpush3.bf16.msra.mxu0 %v1682_v27 }
  0x85   : > { %1380 = vmatpush3.bf16.msra.mxu1 %v1683_v28  ;;  %1359 = vmatprep.subr.bf16.mxu0 %v1684_v29 }
  0x86   : > { %1381 = vmatprep.subr.bf16.mxu1 %v1685_v30 }
  0x88   : > { %1360 = vmatpush3.bf16.msra.mxu0 %v1686_v31 }
  0x89   : > { %1382 = vmatpush3.bf16.msra.mxu1 %v1687_v32 }
  0x8b   : > { %687 = vmatmul.mubr.bf16.vlgmr.msra.gmra.mxu0 %v1283_v35 }
  0x8c   : > { %727 = vmatmul.mubr.bf16.vlgmr.msra.gmra.mxu1 %v1285_v37 }
 0x14b   : > { %v1361_v39 = vpop.f32.mrf.mxu0 }
 0x14c   : > { %v1383_v40 = vpop.f32.mrf.mxu1 }
 0x14d   : > { %v1362_v41 = vpop.f32.mrf.mxu0 }
 0x14e   : > { %v1384_v42 = vpop.f32.mrf.mxu1  ;;  %v1363_v43 = vadd.f32 %v1362_v41, %v1361_v39 }
 0x14f   : > { %v1385_v44 = vadd.f32 %v1384_v42, %v1383_v40  ;;  %v1364_v46 = vpop.f32.mrf.mxu0 }
 0x150   : > { %v1386_v47 = vpop.f32.mrf.mxu1 }
 0x151   : > { %v729_v48 = vadd.f32 %v1385_v44, %v1363_v43  ;;  %v1365_v49 = vpop.f32.mrf.mxu0  ;;  %739 = sbr.rel (%p1319_p1) target bundleno = 1640 (0x668), region = 72 }
 0x152   : > { %v1387_v50 = vpop.f32.mrf.mxu1 }
 0x153   : > { %v734_v51 = vadd.f32 %v729_v48, %v381_v45 }
 0x155   : > { %735 = vst [vmem:[#allocation2] sm:$0xff] %v734_v51 }
 0x156   : > { %v1692_v52 = vld [vmem:[#allocation8 + $0x38] sm:$0xff]   ;;  %v1927_v53 = vmov 0.0   ;;  %v1693_v54 = vld [vmem:[#allocation8 + $0x30] sm:$0xff]   ;;  %vm1928_vm0 = vmmov 0   ;;  %v1694_v55 = vld [vmem:[#allocation8 + $0x28] sm:$0xff]  }
 0x157   : > { %1443 = vmatprep.subr.bf16.mxu0 %v1927_v53  ;;  %1463 = vmatprep.subr.bf16.mxu1 %v1927_v53  ;;  %v2164_v56 = vld [vmem:[#allocation9 + $0x38] sm:$0xff]   ;;  %v1695_v57 = vld [vmem:[#allocation8 + $0x20] sm:$0xff]   ;;  %v2168_v58 = vld [vmem:[#allocation9 + $0x30] sm:$0xff]  }
 0x158   : > { %1444 = vmatpush3.bf16.msra.mxu0 %v1692_v52  ;;  %1459 = vmatprep.mubr.msk.bf16.mxu0 %vm1928_vm0, %v1927_v53  ;;  %v1696_v59 = vld [vmem:[#allocation8 + $0x18] sm:$0xff]   ;;  %v2173_v60 = vld [vmem:[#allocation9 + $0x28] sm:$0xff]   ;;  %v1697_v61 = vld [vmem:[#allocation8 + $0x10] sm:$0xff]  }
 0x159   : > { %1445 = vmatprep.subr.bf16.mxu0 %v1927_v53  ;;  %1479 = vmatprep.mubr.msk.bf16.mxu1 %vm1928_vm0, %v1927_v53  ;;  %v1320_v63 = vld [vmem:[%s2320_s2] ss:$0 sm:$0xff]  ;;  %v1698_v1 = vld [vmem:[#allocation8 + $0x8] sm:$0xff]   ;;  %v1699_v3 = vld [vmem:[#allocation8] sm:$0xff]  }
 0x15a   : > { %1464 = vmatpush3.bf16.msra.mxu1 %v2164_v56  ;;  %v2193_v5 = vld [vmem:[#allocation9 + $0x20] sm:$0xff]   ;;  %v2199_v6 = vld [vmem:[#allocation9 + $0x18] sm:$0xff]   ;;  %v2205_v7 = vld [vmem:[#allocation9 + $0x10] sm:$0xff]  }
 0x15b   : > { %1465 = vmatprep.subr.bf16.mxu1 %v1927_v53  ;;  %v2211_v8 = vld [vmem:[#allocation9 + $0x8] sm:$0xff]   ;;  %v2217_v9 = vld [vmem:[#allocation9] sm:$0xff]   ;;  %v1321_v10 = vld [vmem:[%s2322_s4] ss:$0 sm:$0xff] }
 0x15c   : > { %1446 = vmatpush3.bf16.msra.mxu0 %v1693_v54  ;;  %v740_v62 = vld [vmem:[#allocation2] sm:$0xff] }
 0x15d   : > { %1447 = vmatprep.subr.bf16.mxu0 %v1927_v53  ;;  %v748_v0 = vadd.f32 %v1320_v63, %v740_v62  ;;  %v2247_v18 = vld [vmem:[%s2324_s6] ss:$0 sm:$0xff] }
 0x15e   : > { %1466 = vmatpush3.bf16.msra.mxu1 %v2168_v58 }
 0x15f   : > { %1467 = vmatprep.subr.bf16.mxu1 %v1927_v53  ;;  %v749_v2 = vmax.f32 %v748_v0, 0.0 }
 0x160   : > { %1448 = vmatpush3.bf16.msra.mxu0 %v1694_v55 }
 0x161   : > { %1449 = vmatprep.subr.bf16.mxu0 %v1927_v53  ;;  %v767_v4 = vpack.c.bf16 %v749_v2, %v749_v2 }
 0x162   : > { %1468 = vmatpush3.bf16.msra.mxu1 %v2173_v60 }
 0x163   : > { %1469 = vmatprep.subr.bf16.mxu1 %v1927_v53 }
 0x164   : > { %1450 = vmatpush3.bf16.msra.mxu0 %v1695_v57 }
 0x165   : > { %1451 = vmatprep.subr.bf16.mxu0 %v1927_v53 }
 0x166   : > { %1470 = vmatpush3.bf16.msra.mxu1 %v2193_v5 }
 0x167   : > { %1471 = vmatprep.subr.bf16.mxu1 %v1927_v53 }
 0x168   : > { %1452 = vmatpush3.bf16.msra.mxu0 %v1696_v59 }
 0x169   : > { %1453 = vmatprep.subr.bf16.mxu0 %v1927_v53 }
 0x16a   : > { %1472 = vmatpush3.bf16.msra.mxu1 %v2199_v6 }
 0x16b   : > { %1473 = vmatprep.subr.bf16.mxu1 %v1927_v53 }
 0x16c   : > { %1454 = vmatpush3.bf16.msra.mxu0 %v1697_v61 }
 0x16d   : > { %1455 = vmatprep.subr.bf16.mxu0 %v1927_v53 }
 0x16e   : > { %1474 = vmatpush3.bf16.msra.mxu1 %v2205_v7 }
 0x16f   : > { %1475 = vmatprep.subr.bf16.mxu1 %v1927_v53 }
 0x170   : > { %1456 = vmatpush3.bf16.msra.mxu0 %v1698_v1 }
 0x171   : > { %1457 = vmatprep.subr.bf16.mxu0 %v1927_v53 }
 0x172   : > { %1476 = vmatpush3.bf16.msra.mxu1 %v2211_v8 }
 0x173   : > { %1477 = vmatprep.subr.bf16.mxu1 %v1927_v53 }
 0x174   : > { %1458 = vmatpush3.bf16.msra.mxu0 %v1699_v3 }
 0x175   : > { %1483 = vmatprep.subr.bf16.mxu0 %v1927_v53 }
 0x176   : > { %1478 = vmatpush3.bf16.msra.mxu1 %v2217_v9 }
 0x177   : > { %1460 = vmatmul.mubr.bf16.vlgmr.msra.gmra.mxu0 %v767_v4  ;;  %1503 = vmatprep.subr.bf16.mxu1 %v1927_v53 }
 0x178   : > { %1484 = vmatpush3.bf16.msra.mxu0 %v2164_v56  ;;  %1499 = vmatprep.mubr.msk.bf16.mxu0 %vm1928_vm0, %v1927_v53 }
 0x179   : > { %1485 = vmatprep.subr.bf16.mxu0 %v1927_v53 }
 0x17c   : > { %1486 = vmatpush3.bf16.msra.mxu0 %v2168_v58 }
 0x17d   : > { %1487 = vmatprep.subr.bf16.mxu0 %v1927_v53 }
 0x180   : > { %1488 = vmatpush3.bf16.msra.mxu0 %v2173_v60 }
 0x181   : > { %1489 = vmatprep.subr.bf16.mxu0 %v1927_v53 }
 0x184   : > { %1490 = vmatpush3.bf16.msra.mxu0 %v2193_v5 }
 0x185   : > { %1491 = vmatprep.subr.bf16.mxu0 %v1927_v53 }
 0x188   : > { %1492 = vmatpush3.bf16.msra.mxu0 %v2199_v6 }
 0x189   : > { %1493 = vmatprep.subr.bf16.mxu0 %v1927_v53 }
 0x18c   : > { %1494 = vmatpush3.bf16.msra.mxu0 %v2205_v7 }
 0x18d   : > { %1495 = vmatprep.subr.bf16.mxu0 %v1927_v53 }
 0x190   : > { %1496 = vmatpush3.bf16.msra.mxu0 %v2211_v8 }
 0x191   : > { %1497 = vmatprep.subr.bf16.mxu0 %v1927_v53 }
 0x194   : > { %1498 = vmatpush3.bf16.msra.mxu0 %v2217_v9 }
 0x195   : > { %1523 = vmatprep.subr.bf16.mxu0 %v1927_v53 }
 0x237   : > { %v873_v11 = vpop.f32.mrf.mxu0 }
 0x238   : > { %v874_v12 = vadd.f32 %v1321_v10, %v873_v11 }
 0x239   : > { %v1461_v13 = vpop.f32.mrf.mxu0 }
 0x23a   : > { %1708 = vtanh.f32 %v874_v12 }
 0x23b   : > { %v876_v14 = vpop.f32.mrf.mxu0 }
 0x23d   : > { %v1462_v15 = vpop.f32.mrf.mxu0 }
 0x247   : > { %v1709_v16 = vpop.eup %1708 }
 0x248   : > { %880 = vst [vmem:[#allocation11] sm:$0xff] %v1709_v16  ;;  %v881_v17 = vpack.c.bf16 %v1709_v16, %v1709_v16 }
 0x24a   : > { %1480 = vmatmul.mubr.bf16.vlgmr.msra.gmra.mxu1 %v881_v17 }
 0x24b   : > { %1504 = vmatpush3.bf16.msra.mxu1 %v2164_v56  ;;  %1519 = vmatprep.mubr.msk.bf16.mxu1 %vm1928_vm0, %v1927_v53 }
 0x24c   : > { %1505 = vmatprep.subr.bf16.mxu1 %v1927_v53 }
 0x24f   : > { %1506 = vmatpush3.bf16.msra.mxu1 %v2168_v58 }
 0x250   : > { %1507 = vmatprep.subr.bf16.mxu1 %v1927_v53 }
 0x253   : > { %1508 = vmatpush3.bf16.msra.mxu1 %v2173_v60 }
 0x254   : > { %1509 = vmatprep.subr.bf16.mxu1 %v1927_v53 }
 0x257   : > { %1510 = vmatpush3.bf16.msra.mxu1 %v2193_v5 }
 0x258   : > { %1511 = vmatprep.subr.bf16.mxu1 %v1927_v53 }
 0x25b   : > { %1512 = vmatpush3.bf16.msra.mxu1 %v2199_v6 }
 0x25c   : > { %1513 = vmatprep.subr.bf16.mxu1 %v1927_v53 }
 0x25f   : > { %1514 = vmatpush3.bf16.msra.mxu1 %v2205_v7 }
 0x260   : > { %1515 = vmatprep.subr.bf16.mxu1 %v1927_v53 }
 0x263   : > { %1516 = vmatpush3.bf16.msra.mxu1 %v2211_v8 }
 0x264   : > { %1517 = vmatprep.subr.bf16.mxu1 %v1927_v53 }
 0x267   : > { %1518 = vmatpush3.bf16.msra.mxu1 %v2217_v9 }
 0x268   : > { %1543 = vmatprep.subr.bf16.mxu1 %v1927_v53 }
 0x30a   : > { %v970_v19 = vpop.f32.mrf.mxu1 }
 0x30b   : > { %v971_v20 = vadd.f32 %v2247_v18, %v970_v19 }
 0x30c   : > { %v1481_v21 = vpop.f32.mrf.mxu1 }
 0x30d   : > { %1710 = vtanh.f32 %v971_v20 }
 0x30e   : > { %v973_v22 = vpop.f32.mrf.mxu1 }
 0x310   : > { %v1482_v23 = vpop.f32.mrf.mxu1 }
 0x31a   : > { %v1711_v24 = vpop.eup %1710 }
 0x31b   : > { %977 = vst [vmem:[#allocation11 + $0x8] sm:$0xff] %v1711_v24  ;;  %v978_v25 = vpack.c.bf16 %v1711_v24, %v1711_v24 }
 0x31d   : > { %1500 = vmatmul.mubr.bf16.vlgmr.msra.gmra.mxu0 %v978_v25 }
 0x31e   : > { %1524 = vmatpush3.bf16.msra.mxu0 %v2164_v56  ;;  %1539 = vmatprep.mubr.msk.bf16.mxu0 %vm1928_vm0, %v1927_v53 }
 0x31f   : > { %1525 = vmatprep.subr.bf16.mxu0 %v1927_v53 }
 0x322   : > { %1526 = vmatpush3.bf16.msra.mxu0 %v2168_v58 }
 0x323   : > { %1527 = vmatprep.subr.bf16.mxu0 %v1927_v53 }
 0x326   : > { %1528 = vmatpush3.bf16.msra.mxu0 %v2173_v60 }
 0x327   : > { %1529 = vmatprep.subr.bf16.mxu0 %v1927_v53 }
 0x32a   : > { %1530 = vmatpush3.bf16.msra.mxu0 %v2193_v5 }
 0x32b   : > { %1531 = vmatprep.subr.bf16.mxu0 %v1927_v53 }
 0x32e   : > { %1532 = vmatpush3.bf16.msra.mxu0 %v2199_v6 }
 0x32f   : > { %1533 = vmatprep.subr.bf16.mxu0 %v1927_v53 }
 0x332   : > { %1534 = vmatpush3.bf16.msra.mxu0 %v2205_v7 }
 0x333   : > { %1535 = vmatprep.subr.bf16.mxu0 %v1927_v53 }
 0x336   : > { %1536 = vmatpush3.bf16.msra.mxu0 %v2211_v8 }
 0x337   : > { %1537 = vmatprep.subr.bf16.mxu0 %v1927_v53 }
 0x33a   : > { %1538 = vmatpush3.bf16.msra.mxu0 %v2217_v9 }
 0x3dd   : > { %v1013_v26 = vpop.f32.mrf.mxu0 }
 0x3de   : > { %v1014_v27 = vadd.f32 %v2247_v18, %v1013_v26 }
 0x3df   : > { %v1501_v28 = vpop.f32.mrf.mxu0 }
 0x3e0   : > { %1712 = vtanh.f32 %v1014_v27 }
 0x3e1   : > { %v1016_v29 = vpop.f32.mrf.mxu0 }
 0x3e3   : > { %v1502_v30 = vpop.f32.mrf.mxu0 }
 0x3ed   : > { %v1713_v31 = vpop.eup %1712 }
 0x3ee   : > { %1020 = vst [vmem:[#allocation11 + $0x10] sm:$0xff] %v1713_v31  ;;  %v1021_v32 = vpack.c.bf16 %v1713_v31, %v1713_v31 }
 0x3f0   : > { %1520 = vmatmul.mubr.bf16.vlgmr.msra.gmra.mxu1 %v1021_v32 }
 0x3f1   : > { %1544 = vmatpush3.bf16.msra.mxu1 %v2164_v56  ;;  %1559 = vmatprep.mubr.msk.bf16.mxu1 %vm1928_vm0, %v1927_v53 }
 0x3f2   : > { %1545 = vmatprep.subr.bf16.mxu1 %v1927_v53 }
 0x3f5   : > { %1546 = vmatpush3.bf16.msra.mxu1 %v2168_v58 }
 0x3f6   : > { %1547 = vmatprep.subr.bf16.mxu1 %v1927_v53 }
 0x3f9   : > { %1548 = vmatpush3.bf16.msra.mxu1 %v2173_v60 }
 0x3fa   : > { %1549 = vmatprep.subr.bf16.mxu1 %v1927_v53 }
 0x3fd   : > { %1550 = vmatpush3.bf16.msra.mxu1 %v2193_v5 }
 0x3fe   : > { %1551 = vmatprep.subr.bf16.mxu1 %v1927_v53 }
 0x401   : > { %1552 = vmatpush3.bf16.msra.mxu1 %v2199_v6 }
 0x402   : > { %1553 = vmatprep.subr.bf16.mxu1 %v1927_v53 }
 0x405   : > { %1554 = vmatpush3.bf16.msra.mxu1 %v2205_v7 }
 0x406   : > { %1555 = vmatprep.subr.bf16.mxu1 %v1927_v53 }
 0x409   : > { %1556 = vmatpush3.bf16.msra.mxu1 %v2211_v8 }
 0x40a   : > { %1557 = vmatprep.subr.bf16.mxu1 %v1927_v53 }
 0x40d   : > { %1558 = vmatpush3.bf16.msra.mxu1 %v2217_v9 }
 0x4b0   : > { %v1056_v33 = vpop.f32.mrf.mxu1 }
 0x4b1   : > { %v1057_v34 = vadd.f32 %v2247_v18, %v1056_v33 }
 0x4b2   : > { %v1521_v35 = vpop.f32.mrf.mxu1 }
 0x4b3   : > { %1714 = vtanh.f32 %v1057_v34 }
 0x4b4   : > { %v1059_v36 = vpop.f32.mrf.mxu1 }
 0x4b6   : > { %v1522_v37 = vpop.f32.mrf.mxu1 }
 0x4c0   : > { %v1715_v38 = vpop.eup %1714 }
 0x4c1   : > { %1063 = vst [vmem:[#allocation11 + $0x18] sm:$0xff] %v1715_v38  ;;  %v1064_v39 = vpack.c.bf16 %v1715_v38, %v1715_v38 }
 0x4c3   : > { %1540 = vmatmul.mubr.bf16.vlgmr.msra.gmra.mxu0 %v1064_v39 }
 0x583   : > { %v1099_v40 = vpop.f32.mrf.mxu0 }
 0x584   : > { %v1100_v41 = vadd.f32 %v2247_v18, %v1099_v40 }
 0x585   : > { %v1541_v42 = vpop.f32.mrf.mxu0 }
 0x586   : > { %1716 = vtanh.f32 %v1100_v41 }
 0x587   : > { %v1102_v43 = vpop.f32.mrf.mxu0 }
 0x589   : > { %v1542_v44 = vpop.f32.mrf.mxu0 }
 0x593   : > { %v1717_v45 = vpop.eup %1716 }
 0x594   : > { %1106 = vst [vmem:[#allocation11 + $0x20] sm:$0xff] %v1717_v45  ;;  %v1107_v46 = vpack.c.bf16 %v1717_v45, %v1717_v45 }
 0x596   : > { %1560 = vmatmul.mubr.bf16.vlgmr.msra.gmra.mxu1 %v1107_v46 }
 0x656   : > { %v1142_v47 = vpop.f32.mrf.mxu1 }
 0x657   : > { %v1143_v48 = vadd.f32 %v2247_v18, %v1142_v47 }
 0x658   : > { %v1561_v49 = vpop.f32.mrf.mxu1 }
 0x659   : > { %1718 = vtanh.f32 %v1143_v48 }
 0x65a   : > { %v1145_v50 = vpop.f32.mrf.mxu1 }
 0x65c   : > { %v1562_v51 = vpop.f32.mrf.mxu1 }
 0x666   : > { %v1719_v52 = vpop.eup %1718 }
 0x667   : > { %1149 = vst [vmem:[#allocation11 + $0x28] sm:$0xff] %v1719_v52 }
 0x668 PF: > { %p1598_p4 = scmp.eq.s32.totalorder %s1999_s30, 1  ;;  %s1929_s12 = smov [#allocation11]  }
 0x669   : > { %s1160_s24 = sshll.u32 %s1929_s12, 4  ;;  %s1161_s24 = int_to_ptr.vmem [resolvable:$true] %s1160_s24 }
 0x66a   : > { %s1828_s13 = scalar_lea.vmem %s1161_s24, 768  ;;  %p1835_p3 = scmp.lt.s32.totalorder %s1161_s24, %s1161_s24 }
 0x66b   : > { %p1829_p7 = scmp.ne.s32.totalorder %s1161_s24, %s1828_s13  ;;  %p1836_p6 = scmp.lt.s32.totalorder %s1828_s13, %s1828_s13 }
 0x66d   : > { %p1830_p10 = pnand %p1829_p7, %p1598_p4  ;;  %p1837_p9 = por %p1836_p6, %p1835_p3 }
 0x66f   : > { %p1831_p2 = pneg %p1830_p10 }
 0x671   : > { %p1838_p11 = pnand %p1837_p9, %p1831_p2 }
 0x673   : > { %1841 = shalt.err (!%p1838_p11)
}
 0x674   : > { %1576 = dma.vmem_to_hbm [thread:$0]  (%p1598_p4), %s1161_s24, 768, %s2325_s7, [#allocation5]  }
 0x675   : > { %1893 = dma.done.wait (%p1598_p4), [#allocation5], 768  }
 0x676   : > { %1895 = vsyncadd (%p1598_p4), [#allocation5], 4294966528 }
 0x677 PF: > { %s25_s29 = sadd.s32 1, %s1918_s29   ;;  %s2342_s3 = sld [smem:[#allocation17_spill]] }
 0x678   : > { %p22_p12 = scmp.ge.s32.totalorder %s25_s29, 4   ;;  %s2343_s24 = smov %s1902_s25 }
 0x679   : > { %s2344_s25 = smov %s1906_s26  ;;  %s2345_s26 = smov %s2063_s14 }
 0x67a   : > { %s2346_s27 = smov %s1914_s28  ;;  %24 = sbr.rel (!%p22_p12) target bundleno = 12 (0xc), region = 115 }
 0x67d   : > { %s2347_s28 = smov %s2342_s3 }
 0x67f   :  { %1173 = vsyncpa [#allocation4], 1 }
 0x680   :  { %1175 = vsyncpa [#allocation4 + $0x1], 1 }
 0x681   :  { %1176 = vsyncpa [#allocation7], 1 }
 0x682   :  { %1178 = vsyncpa [#allocation7 + $0x1], 1 }
 0x683   :  { %1179 = vsyncpa [#allocation10], 1 }
 0x684   :  { %1180 = vsyncpa [#allocation5], 1 }
 0x685   :  { %1182 = vsyncpa [#allocation5 + $0x1], 1 }

</bundles_post_ra>
